<compile_context>
chip_gen: v7x
topology: tpu7x:2x2x1
jax: 0.10.0
libtpu: 0.0.40
codegen_flags: <defaults>
</compile_context>

<pallas_src>
import functools

import jax
import jax.numpy as jnp
from jax import lax
from jax.experimental import pallas as pl
from jax.experimental.pallas import tpu as pltpu

LANES = 128
SUBLANES = 8


def _chip_config():
    """Per-generation (num_tensorcores, block_rows_cap, vmem_limit_bytes)."""
    kind = ""
    try:
        kind = jax.devices()[0].device_kind.lower()
    except Exception:
        pass
    if "v7" in kind or "7x" in kind:
        # 2 TCs/chip, only 64 MiB physical VMEM per TC -> moderate tiles.
        cfg = (2, 4096, 48 * 1024 * 1024)
    elif "v6" in kind:
        # 1 TC, 128 MiB physical VMEM -> big tiles to amortize step overhead.
        cfg = (1, 8192, 100 * 1024 * 1024)
    else:
        # v5e & unknown: 1 TC assumed; default scoped VMEM is small, raise it.
        cfg = (1, 4096, 64 * 1024 * 1024)
    # Clamp the requested scoped-VMEM limit against physical capacity when the
    # hardware query is available (harmless if it is not).
    try:
        cap = int(pltpu.get_tpu_info().vmem_capacity_bytes)
        cfg = (cfg[0], cfg[1], min(cfg[2], int(cap * 0.75)))
    except Exception:
        pass
    return cfg


def _focal_kernel(*refs, gammas, alpha, block_rows, blocks_per_core, nblocks,
                  tail_count, has_weight, ncores):
    if has_weight:
        x_ref, t_ref, w_ref, out_ref, acc_ref = refs
    else:
        x_ref, t_ref, out_ref, acc_ref = refs
        w_ref = None

    if ncores == 1:
        j = pl.program_id(0)
        gb = j                                    # global block index
        last_j = pl.num_programs(0) - 1
    else:
        c = pl.program_id(0)                      # "parallel" core-split axis
        j = pl.program_id(1)                      # "arbitrary" reduction axis
        gb = c * blocks_per_core + j
        last_j = pl.num_programs(1) - 1

    @pl.when(j == 0)
    def _():
        acc_ref[...] = jnp.zeros_like(acc_ref)

    def accumulate(vals):
        # (block_rows,128) -> (block_rows/8, 8, 128) keeps every (8,128) vreg
        # intact, so the per-step reduction is pure element-wise VALU adds.
        acc_ref[...] += jnp.sum(vals.reshape(-1, SUBLANES, LANES), axis=0)

    def body():
        x = x_ref[...].astype(jnp.float32)
        t = t_ref[...].astype(jnp.float32)

        # Numerically safe: log_sigmoid is finite for all x, so the positive
        # term never hits 0 * (-inf) = NaN for target==0 at large -x.
        log_pt = jax.nn.log_sigmoid(x)            # log(sigmoid(x))
        log_1mpt = log_pt - x                     # log(1 - sigmoid(x))
        pt = jnp.exp(log_pt)

        # Gamma-independent factors hoisted; sum the modulators over gammas.
        pos_base = (-alpha) * t * log_pt
        neg_base = (-(1.0 - alpha)) * (1.0 - t) * log_1mpt
        one_m_pt = 1.0 - pt
        pos_mod = jnp.zeros_like(pt)
        neg_mod = jnp.zeros_like(pt)
        for g in gammas:
            if g == 0:
                pos_mod += 1.0
                neg_mod += 1.0
            elif g == 1:
                pos_mod += one_m_pt
                neg_mod += pt
            else:
                # g is a Python int when integer-valued -> lax.integer_pow
                # (VALU multiplies), not exp/log on the EUP.
                pos_mod += one_m_pt ** g
                neg_mod += pt ** g

        loss = (pos_base * pos_mod + neg_base * neg_mod) * (1.0 / len(gammas))
        if has_weight:
            loss = loss * w_ref[...].astype(jnp.float32)

        has_tail = tail_count != block_rows * LANES

        def accumulate_masked():
            # Within-block flat index (no int32 overflow for huge inputs);
            # zeroes padded lanes / out-of-range rows of the last block.
            row = lax.broadcasted_iota(jnp.int32, loss.shape, 0)
            lane = lax.broadcasted_iota(jnp.int32, loss.shape, 1)
            idx = row * LANES + lane
            accumulate(jnp.where(idx < tail_count, loss, 0.0))

        if not has_tail:
            accumulate(loss)                      # no mask cost at all
        elif nblocks == 1:
            accumulate_masked()
        else:
            # Only the last real block pays for the iota/mask.
            pl.when(gb == nblocks - 1)(accumulate_masked)
            pl.when(gb != nblocks - 1)(lambda: accumulate(loss))

    if ncores * blocks_per_core != nblocks:
        # Phantom blocks from an uneven 2-core split: skip the body entirely.
        pl.when(gb < nblocks)(body)
    else:
        body()

    @pl.when(j == last_j)
    def _():
        # Lane-dense (1,128) store; single cross-sublane reduce per kernel.
        out_ref[...] = jnp.sum(acc_ref[...], axis=0, keepdims=True)


def weighted_focal_loss(x, target, weight=None, *, gammas=(0, 1), alpha=0.25,
                        reduction="mean"):
    """x, target, weight: same shape (any rank, e.g. NCHW). Returns a scalar."""
    if reduction not in ("mean", "sum"):
        # TODO(synk): reduction='none' would need an elementwise output path.
        raise NotImplementedError("only 'mean' and 'sum' reductions implemented")

    n_real = int(x.size)
    has_weight = weight is not None

    def _norm_gamma(g):
        gf = float(g)
        return int(gf) if gf.is_integer() else gf

    gammas = tuple(_norm_gamma(g) for g in gammas)

    ncores, block_cap, vmem_limit = _chip_config()

    def to_slab(a):
        flat = a.reshape(-1)                 # metadata-only for contiguous arrays
        pad = (-flat.shape[0]) % LANES
        if pad:                              # only when size isn't a multiple of 128
            flat = jnp.pad(flat, (0, pad))
        return flat.reshape(-1, LANES)       # keep native dtype; cast in-kernel

    operands = [to_slab(x), to_slab(target)]
    if has_weight:
        operands.append(to_slab(weight))

    rows = int(operands[0].shape[0])
    block_rows = int(min(block_cap, -(-rows // SUBLANES) * SUBLANES))
    nblocks = int(pl.cdiv(rows, block_rows))
    ncores = int(max(1, min(ncores, nblocks)))
    blocks_per_core = int(pl.cdiv(nblocks, ncores))
    tail_count = int(n_real - (nblocks - 1) * block_rows * LANES)

    if ncores == 1:
        grid = (nblocks,)
        in_map = lambda j: (j, 0)
        out_map = lambda j: (0, 0)
        dim_sem = ("arbitrary",)
    else:
        grid = (ncores, blocks_per_core)
        if ncores * blocks_per_core == nblocks:
            in_map = lambda c, j: (c * blocks_per_core + j, 0)
        else:
            # Clamp phantom blocks so their (discarded) DMA stays in bounds.
            in_map = lambda c, j: (
                jnp.minimum(c * blocks_per_core + j, nblocks - 1), 0)
        out_map = lambda c, j: (c, 0)
        dim_sem = ("parallel", "arbitrary")

    # TODO(synk): on v7x, if xprof shows exposed DMA, try
    # pipeline_mode=pl.Buffered(3) on the input specs (budget vs 64 MiB VMEM).
    in_specs = [pl.BlockSpec((block_rows, LANES), in_map) for _ in operands]

    kernel = functools.partial(
        _focal_kernel, gammas=gammas, alpha=float(alpha),
        block_rows=block_rows, blocks_per_core=blocks_per_core,
        nblocks=nblocks, tail_count=tail_count,
        has_weight=has_weight, ncores=ncores)

    bytes_per_elem = sum(op.dtype.itemsize for op in operands)
    cost = pl.CostEstimate(
        flops=22 * n_real,
        transcendentals=3 * n_real,
        bytes_accessed=bytes_per_elem * rows * LANES + ncores * LANES * 4)

    partials = pl.pallas_call(
        kernel,
        out_shape=jax.ShapeDtypeStruct((ncores, LANES), jnp.float32),
        grid_spec=pltpu.PrefetchScalarGridSpec(
            num_scalar_prefetch=0,
            grid=grid,
            in_specs=in_specs,
            out_specs=pl.BlockSpec((1, LANES), out_map),
            scratch_shapes=[pltpu.VMEM((SUBLANES, LANES), jnp.float32)]),
        compiler_params=pltpu.CompilerParams(
            dimension_semantics=dim_sem,
            vmem_limit_bytes=int(vmem_limit)),
        cost_estimate=cost,
    )(*operands)

    total = jnp.sum(partials)
    if reduction == "mean":
        return total / jnp.float32(n_real)
    return total


def _reference(x, target, weight, gammas=(0, 1), alpha=0.25, reduction="mean"):
    pt = jax.nn.sigmoid(x.astype(jnp.float32))
    t = target.astype(jnp.float32)
    loss = jnp.zeros_like(pt)
    for g in gammas:
        loss += (-alpha * (1 - pt) ** g * t * jnp.log(pt)
                 - (1 - alpha) * pt ** g * (1 - t) * jnp.log(1 - pt))
    loss /= len(gammas)
    loss *= weight.astype(jnp.float32)
    return jnp.mean(loss) if reduction == "mean" else jnp.sum(loss)


if __name__ == "__main__":
    key = jax.random.PRNGKey(0)
    k1, k2, k3 = jax.random.split(key, 3)

    # NCHW-style inputs, small shapes.
    shape = (2, 4, 16, 16)
    x = jax.random.normal(k1, shape, dtype=jnp.float32)
    target = (jax.random.uniform(k2, shape) > 0.5).astype(jnp.float32)
    weight = jax.random.uniform(k3, shape, dtype=jnp.float32) + 0.5

    out = weighted_focal_loss(x, target, weight, gammas=(0, 1), alpha=0.25,
                              reduction="mean")
    out = jax.block_until_ready(out)
    ref = _reference(x, target, weight)
    assert jnp.allclose(out, ref, rtol=1e-5, atol=1e-6), (out, ref)

    # weight=None path (PyTorch uses ones): kernel skips the weight operand.
    out_nw = jax.block_until_ready(
        weighted_focal_loss(x, target, None, gammas=(0, 1), alpha=0.25,
                            reduction="mean"))
    ref_nw = _reference(x, target, jnp.ones_like(x))
    assert jnp.allclose(out_nw, ref_nw, rtol=1e-5, atol=1e-6), (out_nw, ref_nw)

    # Ragged size (not a multiple of 128) exercises the gated tail mask;
    # gammas=(0,1,2) exercises integer_pow; reduction='sum' too.
    shape2 = (2, 3, 7, 11)
    x2 = jax.random.normal(k1, shape2, dtype=jnp.float32) * 3.0
    t2 = (jax.random.uniform(k2, shape2) > 0.5).astype(jnp.float32)
    w2 = jax.random.uniform(k3, shape2, dtype=jnp.float32) + 0.5
    out2 = jax.block_until_ready(
        weighted_focal_loss(x2, t2, w2, gammas=(0, 1, 2), alpha=0.25,
                            reduction="sum"))
    ref2 = _reference(x2, t2, w2, gammas=(0, 1, 2), reduction="sum")
    assert jnp.allclose(out2, ref2, rtol=2e-5, atol=1e-4), (out2, ref2)

    print("KERNEL_OK")
</pallas_src>

<mosaic_0001>
module attributes {stable_mosaic.version = 11 : i64} {
  func.func @_focal_kernel(%arg0: i32, %arg1: memref<16x128xf32, #tpu.memory_space<vmem>>, %arg2: memref<16x128xf32, #tpu.memory_space<vmem>>, %arg3: memref<16x128xf32, #tpu.memory_space<vmem>>, %arg4: memref<1x128xf32, #tpu.memory_space<vmem>>, %arg5: memref<8x128xf32, #tpu.memory_space<vmem>>) attributes {dimension_semantics = [#tpu.dimension_semantics<arbitrary>], iteration_bounds = array<i64: 1>, scalar_prefetch = 0 : i64, scratch_operands = 1 : i64, tpu.core_type = #tpu.core_type<tc>, window_params = [{transform_indices = @transform_0, window_bounds = array<i64: 16, 128>}, {transform_indices = @transform_1, window_bounds = array<i64: 16, 128>}, {transform_indices = @transform_2, window_bounds = array<i64: 16, 128>}, {pipeline_mode = #tpu.pipeline_mode<synchronous>, transform_indices = @transform_3, window_bounds = array<i64: 1, 128>}]} {
    %c0_i32 = arith.constant 0 : i32
    %0 = arith.cmpi eq, %arg0, %c0_i32 : i32
    %1 = arith.extui %0 : i1 to i32
    %c0_i32_0 = arith.constant 0 : i32
    %2 = arith.cmpi ne, %1, %c0_i32_0 : i32
    scf.if %2 {
      %cst_25 = arith.constant 0.000000e+00 : f32
      %58 = vector.broadcast %cst_25 : f32 to vector<8x128xf32>
      %c0_26 = arith.constant 0 : index
      %c0_27 = arith.constant 0 : index
      %59 = vector.load %arg5[%c0_26, %c0_27] : memref<8x128xf32, #tpu.memory_space<vmem>>, vector<8x128xf32>
      tpu.vector_store %arg5[%c0_26, %c0_27], %58 {strides = array<i32>} : memref<8x128xf32, #tpu.memory_space<vmem>>, vector<8x128xf32>,
    } else {
    }
    %c0 = arith.constant 0 : index
    %c0_1 = arith.constant 0 : index
    %3 = vector.load %arg1[%c0, %c0_1] : memref<16x128xf32, #tpu.memory_space<vmem>>, vector<16x128xf32>
    %c0_2 = arith.constant 0 : index
    %c0_3 = arith.constant 0 : index
    %4 = vector.load %arg2[%c0_2, %c0_3] : memref<16x128xf32, #tpu.memory_space<vmem>>, vector<16x128xf32>
    %cst = arith.constant 0.000000e+00 : f32
    %5 = vector.broadcast %cst : f32 to vector<16x128xf32>
    %6 = arith.subf %5, %3 : vector<16x128xf32>
    %cst_4 = arith.constant 0.000000e+00 : f32
    %7 = vector.broadcast %cst_4 : f32 to vector<16x128xf32>
    %8 = arith.maximumf %6, %7 : vector<16x128xf32>
    %9 = vector.broadcast %cst_4 : f32 to vector<16x128xf32>
    %10 = arith.subf %6, %9 : vector<16x128xf32>
    %11 = arith.cmpf one, %10, %10 : vector<16x128xf32>
    %12 = vector.broadcast %cst_4 : f32 to vector<16x128xf32>
    %13 = arith.addf %6, %12 : vector<16x128xf32>
    %14 = math.absf %10 : vector<16x128xf32>
    %cst_5 = arith.constant 0.000000e+00 : f32
    %15 = vector.broadcast %cst_5 : f32 to vector<16x128xf32>
    %16 = arith.subf %15, %14 : vector<16x128xf32>
    %17 = math.exp %16 : vector<16x128xf32>
    %18 = math.log1p %17 : vector<16x128xf32>
    %19 = arith.addf %8, %18 : vector<16x128xf32>
    %20 = arith.select %11, %13, %19 : vector<16x128xi1>, vector<16x128xf32>
    %cst_6 = arith.constant 0.000000e+00 : f32
    %21 = vector.broadcast %cst_6 : f32 to vector<16x128xf32>
    %22 = arith.subf %21, %20 : vector<16x128xf32>
    %23 = arith.subf %22, %3 : vector<16x128xf32>
    %24 = math.exp %22 : vector<16x128xf32>
    %cst_7 = arith.constant -2.500000e-01 : f32
    %25 = vector.broadcast %cst_7 : f32 to vector<16x128xf32>
    %26 = arith.mulf %25, %4 : vector<16x128xf32>
    %27 = arith.mulf %26, %22 : vector<16x128xf32>
    %cst_8 = arith.constant 1.000000e+00 : f32
    %28 = vector.broadcast %cst_8 : f32 to vector<16x128xf32>
    %29 = arith.subf %28, %4 : vector<16x128xf32>
    %cst_9 = arith.constant -7.500000e-01 : f32
    %30 = vector.broadcast %cst_9 : f32 to vector<16x128xf32>
    %31 = arith.mulf %30, %29 : vector<16x128xf32>
    %32 = arith.mulf %31, %23 : vector<16x128xf32>
    %cst_10 = arith.constant 1.000000e+00 : f32
    %33 = vector.broadcast %cst_10 : f32 to vector<16x128xf32>
    %34 = arith.subf %33, %24 : vector<16x128xf32>
    %cst_11 = arith.constant 0.000000e+00 : f32
    %35 = vector.broadcast %cst_11 : f32 to vector<16x128xf32>
    %cst_12 = arith.constant 0.000000e+00 : f32
    %36 = vector.broadcast %cst_12 : f32 to vector<16x128xf32>
    %cst_13 = arith.constant 1.000000e+00 : f32
    %37 = vector.broadcast %cst_13 : f32 to vector<16x128xf32>
    %38 = arith.addf %35, %37 : vector<16x128xf32>
    %cst_14 = arith.constant 1.000000e+00 : f32
    %39 = vector.broadcast %cst_14 : f32 to vector<16x128xf32>
    %40 = arith.addf %36, %39 : vector<16x128xf32>
    %41 = arith.addf %38, %34 : vector<16x128xf32>
    %42 = arith.addf %40, %24 : vector<16x128xf32>
    %43 = arith.mulf %27, %41 : vector<16x128xf32>
    %44 = arith.mulf %32, %42 : vector<16x128xf32>
    %45 = arith.addf %43, %44 : vector<16x128xf32>
    %cst_15 = arith.constant 5.000000e-01 : f32
    %46 = vector.broadcast %cst_15 : f32 to vector<16x128xf32>
    %47 = arith.mulf %45, %46 : vector<16x128xf32>
    %c0_16 = arith.constant 0 : index
    %c0_17 = arith.constant 0 : index
    %48 = vector.load %arg3[%c0_16, %c0_17] : memref<16x128xf32, #tpu.memory_space<vmem>>, vector<16x128xf32>
    %49 = arith.mulf %47, %48 : vector<16x128xf32>
    %c0_18 = arith.constant 0 : index
    %c0_19 = arith.constant 0 : index
    %50 = vector.load %arg5[%c0_18, %c0_19] : memref<8x128xf32, #tpu.memory_space<vmem>>, vector<8x128xf32>
    %51 = vector.shape_cast %49 : vector<16x128xf32> to vector<2x8x128xf32>
    %cst_20 = arith.constant dense<0.000000e+00> : vector<8x128xf32>
    %52 = vector.multi_reduction <add>, %51, %cst_20 [0] : vector<2x8x128xf32> to vector<8x128xf32>
    %53 = arith.addf %50, %52 : vector<8x128xf32>
    %c0_21 = arith.constant 0 : index
    %c0_22 = arith.constant 0 : index
    %54 = vector.load %arg5[%c0_21, %c0_22] : memref<8x128xf32, #tpu.memory_space<vmem>>, vector<8x128xf32>
    tpu.vector_store %arg5[%c0_21, %c0_22], %53 {strides = array<i32>} : memref<8x128xf32, #tpu.memory_space<vmem>>, vector<8x128xf32>,
    %c0_i32_23 = arith.constant 0 : i32
    %55 = arith.cmpi eq, %arg0, %c0_i32_23 : i32
    %56 = arith.extui %55 : i1 to i32
    %c0_i32_24 = arith.constant 0 : i32
    %57 = arith.cmpi ne, %56, %c0_i32_24 : i32
    scf.if %57 {
      %c0_25 = arith.constant 0 : index
      %c0_26 = arith.constant 0 : index
      %58 = vector.load %arg5[%c0_25, %c0_26] : memref<8x128xf32, #tpu.memory_space<vmem>>, vector<8x128xf32>
      %cst_27 = arith.constant dense<0.000000e+00> : vector<128xf32>
      %59 = vector.multi_reduction <add>, %58, %cst_27 [0] : vector<8x128xf32> to vector<128xf32>
      %60 = vector.shape_cast %59 : vector<128xf32> to vector<1x128xf32>
      %c0_28 = arith.constant 0 : index
      %c0_29 = arith.constant 0 : index
      %61 = vector.load %arg4[%c0_28, %c0_29] : memref<1x128xf32, #tpu.memory_space<vmem>>, vector<1x128xf32>
      tpu.vector_store %arg4[%c0_28, %c0_29], %60 {strides = array<i32>} : memref<1x128xf32, #tpu.memory_space<vmem>>, vector<1x128xf32>,
    } else {
    }
    return
  }
  func.func @transform_0(%arg0: i32) -> (i32, i32) {
    %c0_i32 = arith.constant 0 : i32
    %c0_i32_0 = arith.constant 0 : i32
    return %arg0, %c0_i32 : i32, i32
  }
  func.func @transform_1(%arg0: i32) -> (i32, i32) {
    %c0_i32 = arith.constant 0 : i32
    %c0_i32_0 = arith.constant 0 : i32
    return %arg0, %c0_i32 : i32, i32
  }
  func.func @transform_2(%arg0: i32) -> (i32, i32) {
    %c0_i32 = arith.constant 0 : i32
    %c0_i32_0 = arith.constant 0 : i32
    return %arg0, %c0_i32 : i32, i32
  }
  func.func @transform_3(%arg0: i32) -> (i32, i32) {
    %c0_i32 = arith.constant 0 : i32
    %c0_i32_0 = arith.constant 0 : i32
    %c0_i32_1 = arith.constant 0 : i32
    return %c0_i32, %c0_i32_0 : i32, i32
  }
}

</mosaic_0001>

<bundles_post_ra>
// kernel: tpu_custom_call.1
= control target key start
LH: loop header
LB: loop body
LE: loop exit
PB: predicated region body
PF: predicated region fallthrough
CT: control target
= control target key end

     0   :  { %8 = vsyncpa [#allocation4], 0  ;;  %s372_s0 = inlined_call_operand.hbm [shape: f32[16,128], index: 0, kind: input, shape index: {}]   ;;  %s373_s1 = inlined_call_operand.hbm [shape: f32[16,128], index: 1, kind: input, shape index: {}]   ;;  %s374_s2 = inlined_call_operand.hbm [shape: f32[16,128], index: 2, kind: input, shape index: {}]   ;;  %s375_s3 = inlined_call_operand.hbm [shape: f32[1,128], index: 3, kind: output, shape index: {}]  }
   0x1   :  { %9 = vsyncpa [#allocation7], 0 }
   0x2   :  { %10 = vsyncpa [#allocation5], 0  ;;  %s282_s12 = smov [#allocation6]   ;;  %s283_s14 = smov [#allocation3]  }
   0x3   :  { %s28_s13 = sshll.u32 %s282_s12, 4  ;;  %s16_s15 = sshll.u32 %s283_s14, 4  ;;  %s29_s13 = int_to_ptr.vmem [resolvable:$true] %s28_s13  ;;  %s308_s15 = int_to_ptr.vmem [resolvable:$true] %s16_s15 }
   0x4   :  { %s188_s18 = scalar_lea.hbm %s373_s1, 256 }
   0x5   :  { %p189_p0 = scmp.ne.s32.totalorder %s373_s1, %s188_s18  ;;  %p192_p1 = scmp.lt.u32.totalorder %s188_s18, %s373_s1 }
   0x7   :  { %p194_p2 = pnand %p192_p1, %p189_p0 }
   0x9   :  { %197 = shalt.err (!%p194_p2)
}
   0xa   :  { %s198_s23 = scalar_lea.vmem %s29_s13, 256  ;;  %p203_p4 = scmp.lt.s32.totalorder %s29_s13, %s29_s13 }
   0xb   :  { %p199_p3 = scmp.ne.s32.totalorder %s29_s13, %s198_s23  ;;  %p204_p5 = scmp.lt.s32.totalorder %s198_s23, %s198_s23 }
   0xd   :  { %p205_p6 = por %p204_p5, %p203_p4 }
   0xf   :  { %p206_p7 = pnand %p205_p6, %p199_p3 }
  0x11   :  { %209 = shalt.err (!%p206_p7)
}
  0x12   :  { %s284_s24 = smov 128   ;;  %s285_s25 = smov 8  }
  0x13   :  { %34 = dma.hbm_to_vmem [thread:$0]  %s373_s1, 256, %s29_s13, [#allocation7], %s284_s24, %s284_s24, %s285_s25  }
  0x14   :  { %s210_s30 = scalar_lea.hbm %s372_s0, 256 }
  0x15   :  { %p211_p8 = scmp.ne.s32.totalorder %s372_s0, %s210_s30  ;;  %p214_p9 = scmp.lt.u32.totalorder %s210_s30, %s372_s0 }
  0x17   :  { %p216_p10 = pnand %p214_p9, %p211_p8 }
  0x19   :  { %219 = shalt.err (!%p216_p10)
}
  0x1a   :  { %s220_s8 = scalar_lea.vmem %s308_s15, 256  ;;  %p225_p12 = scmp.lt.s32.totalorder %s308_s15, %s308_s15 }
  0x1b   :  { %p221_p11 = scmp.ne.s32.totalorder %s308_s15, %s220_s8  ;;  %p226_p13 = scmp.lt.s32.totalorder %s220_s8, %s220_s8 }
  0x1d   :  { %p227_p0 = por %p226_p13, %p225_p12 }
  0x1f   :  { %p228_p1 = pnand %p227_p0, %p221_p11 }
  0x21   :  { %231 = shalt.err (!%p228_p1)
}
  0x22   :  { %22 = dma.hbm_to_vmem [thread:$0]  %s372_s0, 256, %s308_s15, [#allocation4], %s284_s24, %s284_s24, %s285_s25  }
  0x23   :  { %s286_s10 = smov [#allocation8]   ;;  %s232_s14 = scalar_lea.hbm %s374_s2, 256 }
  0x24   :  { %s40_s11 = sshll.u32 %s286_s10, 4  ;;  %p233_p2 = scmp.ne.s32.totalorder %s374_s2, %s232_s14  ;;  %s41_s11 = int_to_ptr.vmem [resolvable:$true] %s40_s11 }
  0x25   :  { %p236_p3 = scmp.lt.u32.totalorder %s232_s14, %s374_s2 }
  0x27   :  { %p238_p4 = pnand %p236_p3, %p233_p2 }
  0x29   :  { %241 = shalt.err (!%p238_p4)
}
  0x2a   :  { %s242_s20 = scalar_lea.vmem %s41_s11, 256  ;;  %p247_p6 = scmp.lt.s32.totalorder %s41_s11, %s41_s11 }
  0x2b   :  { %p243_p5 = scmp.ne.s32.totalorder %s41_s11, %s242_s20  ;;  %p248_p7 = scmp.lt.s32.totalorder %s242_s20, %s242_s20 }
  0x2d   :  { %p249_p8 = por %p248_p7, %p247_p6 }
  0x2f   :  { %p250_p9 = pnand %p249_p8, %p243_p5 }
  0x31   :  { %253 = shalt.err (!%p250_p9)
}
  0x32   :  { %46 = dma.hbm_to_vmem [thread:$0]  %s374_s2, 256, %s41_s11, [#allocation7], %s284_s24, %s284_s24, %s285_s25  }
  0x33   :  { %276 = dma.done.wait [#allocation4], 256  }
  0x34   :  { %277 = vsyncadd [#allocation4], 4294967040 }
  0x35   :  { %278 = dma.done.wait [#allocation7], 512  }
  0x36   :  { %279 = vsyncadd [#allocation7], 4294966784  ;;  %v61_v0 = vld [vmem:[#allocation3] sm:$0xff]  ;;  %v62_v1 = vld [vmem:[#allocation3 + $0x8] sm:$0xff]  ;;  %s287_s2 = smov [#allocation9]  }
  0x37   :  { %v65_v2 = vsub.f32 0.0, %v61_v0  ;;  %v66_v3 = vsub.f32 0.0, %v62_v1  ;;  %v63_v36 = vld [vmem:[#allocation6] sm:$0xff]  ;;  %v64_v38 = vld [vmem:[#allocation6 + $0x8] sm:$0xff]  ;;  %s160_s21 = sshll.u32 %s287_s2, 4  ;;  %s161_s21 = int_to_ptr.vmem [resolvable:$true] %s160_s21 }
  0x38   :  { %v115_v40 = vsub.f32 1.0, %v63_v36  ;;  %v116_v41 = vsub.f32 1.0, %v64_v38  ;;  %v111_v46 = vmul.f32 -0.25, %v63_v36  ;;  %v112_v47 = vmul.f32 -0.25, %v64_v38  ;;  %s254_s22 = scalar_lea.vmem %s161_s21, 16  ;;  %s258_s23 = scalar_lea.vmem %s161_s21, 32 }
  0x39   :  { %v73_v4 = vand.u32 2147483647, %v65_v2  ;;  %v74_v5 = vand.u32 2147483647, %v66_v3  ;;  %v67_v22 = vmax.f32 %v65_v2, 0.0  ;;  %v68_v25 = vmax.f32 %v66_v3, 0.0  ;;  %p255_p10 = scmp.ne.s32.totalorder %s161_s21, %s254_s22  ;;  %p259_p11 = scmp.lt.s32.totalorder %s161_s21, %s161_s21 }
  0x3a   :  { %vm69_vm2 = vcmp.ne.f32.partialorder %v65_v2, %v65_v2  ;;  %vm70_vm3 = vcmp.ne.f32.partialorder %v66_v3, %v66_v3  ;;  %v117_v43 = vmul.f32 -0.75, %v115_v40  ;;  %v118_v45 = vmul.f32 -0.75, %v116_v41  ;;  %p260_p12 = scmp.lt.s32.totalorder %s258_s23, %s254_s22 }
  0x3b   :  { %v75_v6 = vsub.f32 0.0, %v73_v4  ;;  %v76_v7 = vsub.f32 0.0, %v74_v5  ;;  %v136_v4 = vld [vmem:[#allocation8 + $0x8] sm:$0xff] }
  0x3c   :  { %p261_p13 = por %p260_p12, %p259_p11 }
  0x3d   :  { %v77_v8 = vmul.f32 1.442695, %v75_v6  ;;  %v79_v9 = vmul.f32 1.442695, %v76_v7 }
  0x3e   :  { %p262_p0 = pnand %p261_p13, %p255_p10 }
  0x3f   :  { %176 = vpow2.f32 %v77_v8 }
  0x40   :  { %178 = vpow2.f32 %v79_v9 }
  0x49   :  { %v177_v10 = vpop.eup %176 }
  0x4a   :  { %v179_v11 = vpop.eup %178  ;;  %v81_v12 = vadd.f32 1.0, %v177_v10  ;;  %v84_v14 = vmul.f32 -0.5, %v177_v10  ;;  %v87_v17 = vand.u32 2147483647, %v177_v10 }
  0x4b   :  { %v90_v13 = vadd.f32 1.0, %v179_v11  ;;  %v93_v15 = vmul.f32 -0.5, %v179_v11  ;;  %v96_v19 = vand.u32 2147483647, %v179_v11 }
  0x4c   :  { %180 = vlog2.f32 %v81_v12  ;;  %v85_v16 = vadd.f32 1.0, %v84_v14  ;;  %vm88_vm0 = vcmp.lt.f32.partialorder %v87_v17, 0.0004427343 }
  0x4d   :  { %182 = vlog2.f32 %v90_v13  ;;  %v94_v18 = vadd.f32 1.0, %v93_v15  ;;  %vm97_vm1 = vcmp.lt.f32.partialorder %v96_v19, 0.0004427343 }
  0x4e   :  { %v86_v20 = vmul.f32 %v177_v10, %v85_v16 }
  0x4f   :  { %v95_v23 = vmul.f32 %v179_v11, %v94_v18 }
  0x56   :  { %v181_v21 = vpop.eup %180 }
  0x57   :  { %v183_v24 = vpop.eup %182  ;;  %v83_v26 = vmul.f32 0.6931472, %v181_v21 }
  0x58   :  { %v92_v27 = vmul.f32 0.6931472, %v183_v24 }
  0x59   :  { %v89_v28 = vsel %vm88_vm0, %v86_v20, %v83_v26 }
  0x5a   :  { %v98_v29 = vsel %vm97_vm1, %v95_v23, %v92_v27  ;;  %v99_v30 = vadd.f32 %v89_v28, %v67_v22 }
  0x5b   :  { %v100_v31 = vadd.f32 %v98_v29, %v68_v25 }
  0x5c   :  { %v101_v32 = vsel %vm69_vm2, %v65_v2, %v99_v30  ;;  %v135_v2 = vld [vmem:[#allocation8] sm:$0xff] }
  0x5d   :  { %v102_v33 = vsel %vm70_vm3, %v66_v3, %v100_v31  ;;  %v103_v34 = vsub.f32 0.0, %v101_v32 }
  0x5e   :  { %v104_v35 = vsub.f32 0.0, %v102_v33 }
  0x5f   :  { %v107_v37 = vmul.f32 1.442695, %v103_v34  ;;  %v105_v42 = vsub.f32 %v103_v34, %v61_v0  ;;  %v113_v52 = vmul.f32 %v111_v46, %v103_v34 }
  0x60   :  { %v109_v39 = vmul.f32 1.442695, %v104_v35  ;;  %v106_v44 = vsub.f32 %v104_v35, %v62_v1  ;;  %v114_v55 = vmul.f32 %v112_v47, %v104_v35 }
  0x61   :  { %184 = vpow2.f32 %v107_v37  ;;  %v119_v48 = vmul.f32 %v117_v43, %v105_v42 }
  0x62   :  { %186 = vpow2.f32 %v109_v39  ;;  %v120_v50 = vmul.f32 %v118_v45, %v106_v44 }
  0x6b   :  { %v185_v49 = vpop.eup %184 }
  0x6c   :  { %v187_v51 = vpop.eup %186  ;;  %v121_v53 = vsub.f32 1.0, %v185_v49  ;;  %v125_v54 = vadd.f32 1.0, %v185_v49 }
  0x6d   :  { %v122_v56 = vsub.f32 1.0, %v187_v51  ;;  %v126_v57 = vadd.f32 1.0, %v187_v51 }
  0x6e   :  { %v123_v58 = vadd.f32 1.0, %v121_v53  ;;  %v129_v59 = vmul.f32 %v125_v54, %v119_v48 }
  0x6f   :  { %v124_v60 = vadd.f32 1.0, %v122_v56  ;;  %v130_v61 = vmul.f32 %v126_v57, %v120_v50 }
  0x70   :  { %v127_v62 = vmul.f32 %v123_v58, %v113_v52 }
  0x71   :  { %v128_v63 = vmul.f32 %v124_v60, %v114_v55 }
  0x72   :  { %v131_v0 = vadd.f32 %v129_v59, %v127_v62 }
  0x73   :  { %v132_v1 = vadd.f32 %v130_v61, %v128_v63 }
  0x74   :  { %v133_v3 = vmul.f32 0.5, %v131_v0 }
  0x75   :  { %v134_v5 = vmul.f32 0.5, %v132_v1 }
  0x76   :  { %v137_v6 = vmul.f32 %v135_v2, %v133_v3 }
  0x77   :  { %v138_v7 = vmul.f32 %v136_v4, %v134_v5 }
  0x79   :  { %v140_v8 = vadd.f32 %v138_v7, %v137_v6 }
  0x7b   :  { %v147_v9 = vrot.slane %v140_v8, 4 }
  0x7d   :  { %v148_v10 = vadd.f32 %v147_v9, %v140_v8 }
  0x7f   :  { %v149_v11 = vrot.slane %v148_v10, 2 }
  0x81   :  { %v150_v12 = vadd.f32 %v149_v11, %v148_v10 }
  0x83   :  { %v151_v13 = vrot.slane %v150_v12, 1 }
  0x85   :  { %v152_v14 = vadd.f32 %v151_v13, %v150_v12 }
  0x87   :  { %153 = vst [vmem:[#allocation9] sm:$0x1] %v152_v14 }
  0x88   :  { %265 = shalt.err (!%p262_p0)
}
  0x89   :  { %s266_s26 = scalar_lea.hbm %s375_s3, 16 }
  0x8a   :  { %p267_p1 = scmp.ne.s32.totalorder %s375_s3, %s266_s26  ;;  %p270_p2 = scmp.lt.u32.totalorder %s266_s26, %s375_s3 }
  0x8c   :  { %p272_p3 = pnand %p270_p2, %p267_p1 }
  0x8e   :  { %275 = shalt.err (!%p272_p3)
}
  0x8f   :  { %163 = dma.vmem_to_hbm [thread:$0]  %s161_s21, 16, %s375_s3, [#allocation5]  }
  0x90   :  { %280 = dma.done.wait [#allocation5], 16  }
  0x91   :  { %281 = vsyncadd [#allocation5], 4294967280 }
  0x92   :  { %167 = vsyncpa [#allocation4], 1 }
  0x93   :  { %168 = vsyncpa [#allocation7], 1 }
  0x94   :  { %169 = vsyncpa [#allocation5], 1 }

</bundles_post_ra>
